<compile_context>
chip_gen: v5e
topology: v5e:2x2
jax: 0.10.0
libtpu: 0.0.40
codegen_flags: <defaults>
</compile_context>

<pallas_src>
import functools

import jax
import jax.numpy as jnp
from jax.experimental import pallas as pl
from jax.experimental.pallas import tpu as pltpu


# ---------------------------------------------------------------------------
# helpers
# ---------------------------------------------------------------------------
def _round_up(n, m):
    return ((n + m - 1) // m) * m


def _nbytes(shape, dtype):
    n = 1
    for d in shape:
        n *= int(d)
    return n * jnp.dtype(dtype).itemsize


def _vmem_cap():
    """~75% of physical VMEM, capped at 64 MiB (generation-aware: ~48 MiB on v7x)."""
    try:
        phys = int(pltpu.get_tpu_info().vmem_capacity_bytes)
    except Exception:  # noqa: BLE001 - conservative fallback if query unavailable
        phys = 128 << 20
    return int(min(64 << 20, (phys * 3) // 4))


def _vmem_limit(block_bytes):
    need = 2 * block_bytes + (4 << 20)
    return int(min(max(need, 16 << 20), _vmem_cap()))


def _k2_bytes(tq, t, c):
    """Approximate kernel-2 VMEM footprint for tile sizing / limit derivation."""
    f32, bf = jnp.float32, jnp.bfloat16
    return (2 * _nbytes((tq, c), f32)            # x tile in + out tile
            + _nbytes((1, t), f32)               # additive mask bias
            + 2 * _nbytes((t, c), bf)            # K, V (full padded seq)
            + 2 * _nbytes((c, c), bf)            # Wq, Wp
            + 2 * _nbytes((c, 4 * c), bf)        # W1, W2
            + 5 * _nbytes((1, c), f32) + _nbytes((1, 4 * c), f32)
            + _nbytes((tq, t), f32)              # score block headroom
            + _nbytes((tq, 4 * c), f32))         # FFN intermediate headroom


def _const_spec(shape, single_buffer):
    # Constant-index operands (weights, LN params, biases) are fetched once; with
    # pipeline_mode=pl.Buffered(1) they are not double-buffered, halving their
    # resident VMEM (matters at realistic C, especially on v7x's 64 MiB VMEM).
    index_map = lambda b, t: (0,) * len(shape)
    if single_buffer:
        return pl.BlockSpec(shape, index_map, pipeline_mode=pl.Buffered(1))
    return pl.BlockSpec(shape, index_map)


# ---------------------------------------------------------------------------
# Kernel 1: LayerNorm(x) -> fused K/V projection (bf16 outputs)
# ---------------------------------------------------------------------------
def _ln_kv_kernel(x_ref, g_ref, b_ref, wkv_ref, k_ref, v_ref, *, C):
    eps = jnp.float32(1e-5)
    x = x_ref[...]                                           # (TQ, C) f32
    mu = jnp.mean(x, axis=-1, keepdims=True)
    var = jnp.mean((x - mu) ** 2, axis=-1, keepdims=True)
    xn = ((x - mu) * jax.lax.rsqrt(var + eps) * g_ref[...] + b_ref[...])
    xn = xn.astype(jnp.bfloat16)
    kv = jnp.dot(xn, wkv_ref[...],                           # (TQ, 2C), f32 acc
                 preferred_element_type=jnp.float32)
    k_ref[...] = kv[:, :C].astype(jnp.bfloat16)
    v_ref[...] = kv[:, C:].astype(jnp.bfloat16)


# ---------------------------------------------------------------------------
# Kernel 2: LN1(q tile) + Q proj + attention + per-head output proj accumulation
#           + residual + LN2 + FFN + residual
# ---------------------------------------------------------------------------
def _attn_ffn_kernel(x_ref, bias_ref, k_ref, v_ref,
                     g1_ref, be1_ref, wq_ref,
                     wp_ref, bp_ref, g2_ref, be2_ref,
                     w1_ref, bf1_ref, w2_ref, bf2_ref,
                     o_ref, *, H, HS):
    eps = jnp.float32(1e-5)
    f32, bf16 = jnp.float32, jnp.bfloat16

    x = x_ref[...]                    # (TQ, C) f32 residual stream
    bias = bias_ref[...]              # (1, T)  f32 additive mask (0 / -1e30)
    k = k_ref[...]                    # (T, C)  bf16
    v = v_ref[...]                    # (T, C)  bf16

    # ----- LayerNorm 1 on the query tile (recomputed here to avoid a Q HBM
    # round trip) + Q projection; the 1/sqrt(C) scale is folded into Wq. -----
    mu = jnp.mean(x, axis=-1, keepdims=True)
    var = jnp.mean((x - mu) ** 2, axis=-1, keepdims=True)
    xn1 = ((x - mu) * jax.lax.rsqrt(var + eps) * g1_ref[...] + be1_ref[...])
    xn1 = xn1.astype(bf16)
    q = jnp.dot(xn1, wq_ref[...], preferred_element_type=f32).astype(bf16)  # (TQ, C)

    # ----- multi-head attention: static unrolled head loop, no transpose
    # (dot_general contracts last dims), no concat / scratch writes — the output
    # projection is accumulated per head into an f32 accumulator. -----
    sa = jnp.zeros(x.shape, dtype=f32)
    for h in range(H):
        sl = slice(h * HS, (h + 1) * HS)
        s = jax.lax.dot_general(q[:, sl], k[:, sl], (((1,), (1,)), ((), ())),
                                preferred_element_type=f32)       # (TQ, T)
        s = s + bias                                              # additive mask
        s = s - jnp.max(s, axis=-1, keepdims=True)                # stable softmax
        e = jnp.exp(s)
        inv = pl.reciprocal(jnp.sum(e, axis=-1, keepdims=True), approx=True)
        p = (e * inv).astype(bf16)
        oh = jnp.dot(p, v[:, sl], preferred_element_type=f32)     # (TQ, HS)
        sa = sa + jnp.dot(oh.astype(bf16), wp_ref[sl, :],
                          preferred_element_type=f32)             # (TQ, C)
    # TODO(synk): for very long T, stream K/V flash-style (online softmax over an
    # extra "arbitrary" T_k grid axis) instead of holding full (T, C) K/V per batch.

    x = x + sa + bp_ref[...]

    # ----- LayerNorm 2 + FFN (dropout = identity) -----
    mu2 = jnp.mean(x, axis=-1, keepdims=True)
    var2 = jnp.mean((x - mu2) ** 2, axis=-1, keepdims=True)
    xn2 = ((x - mu2) * jax.lax.rsqrt(var2 + eps) * g2_ref[...] + be2_ref[...])
    xn2 = xn2.astype(bf16)
    h1 = jnp.dot(xn2, w1_ref[...], preferred_element_type=f32) + bf1_ref[...]
    h1 = jnp.maximum(h1, 0.0).astype(bf16)
    ff = jnp.dot(h1, w2_ref[...], preferred_element_type=f32) + bf2_ref[...]

    o_ref[...] = x + ff


# ---------------------------------------------------------------------------
# Host wrapper
# ---------------------------------------------------------------------------
def _block_forward(x, attn_mask, params, *, n_head, q_tile, single_buffer_consts):
    B, T, C = x.shape
    assert C % n_head == 0
    HS = C // n_head
    bf, f32 = jnp.bfloat16, jnp.float32

    # ----- query-tile selection + host-side padding of T to a TQ multiple -----
    if q_tile is not None:
        if q_tile % 8 != 0:
            raise ValueError("q_tile must be a multiple of 8 (TPU (8,128) tiling)")
        TQ = int(q_tile)
    elif T >= 256 and 2 * _k2_bytes(256, _round_up(T, 256), C) + (4 << 20) <= _vmem_cap():
        TQ = 256                                # fills the 256x256 MXU (v6e/v7x)
    elif T >= 128:
        TQ = 128
    else:
        TQ = _round_up(T, 8)
    T_pad = _round_up(T, TQ)
    NT = T_pad // TQ
    if T_pad != T:
        x_p = jnp.pad(x, ((0, 0), (0, T_pad - T), (0, 0)))
        mask_p = jnp.pad(attn_mask, ((0, 0), (0, T_pad - T)))   # 0 => masked key
    else:
        x_p, mask_p = x, attn_mask

    # additive mask bias: 0.0 for keep, -1e30 for masked / padded key positions
    mask_bias = jnp.where(mask_p == 0, -1e30, 0.0).astype(f32).reshape(B, 1, T_pad)

    # bf16 weights for the MXU (biases / LN params stay f32); scale folded into Wq
    scale = float(C) ** -0.5
    wq = (params["wq"] * scale).astype(bf)
    wkv = jnp.concatenate([params["wk"], params["wv"]], axis=1).astype(bf)
    wp = params["wp"].astype(bf)
    w1 = params["w1"].astype(bf)
    w2 = params["w2"].astype(bf)
    # TODO(synk): optional int8 (v5e/v6e) or fp8 (v7x) weight quantization path.

    cs = functools.partial(_const_spec, single_buffer=single_buffer_consts)

    # ---------------- kernel 1: LN1 + K/V projection ----------------
    k1_bytes = (_nbytes((TQ, C), f32) + 2 * _nbytes((1, C), f32)
                + _nbytes((C, 2 * C), bf) + 2 * _nbytes((TQ, C), bf))
    k, v = pl.pallas_call(
        functools.partial(_ln_kv_kernel, C=C),
        out_shape=(jax.ShapeDtypeStruct((B, T_pad, C), bf),
                   jax.ShapeDtypeStruct((B, T_pad, C), bf)),
        grid=(B, NT),
        in_specs=[
            pl.BlockSpec((None, TQ, C), lambda b, t: (b, t, 0)),   # x tile
            cs((1, C)), cs((1, C)),                                # ln1 gamma/beta
            cs((C, 2 * C)),                                        # fused Wkv (bf16)
        ],
        out_specs=(pl.BlockSpec((None, TQ, C), lambda b, t: (b, t, 0)),
                   pl.BlockSpec((None, TQ, C), lambda b, t: (b, t, 0))),
        compiler_params=pltpu.CompilerParams(
            dimension_semantics=("parallel", "parallel"),
            vmem_limit_bytes=_vmem_limit(k1_bytes)),
    )(x_p, params["g1"], params["be1"], wkv)

    # ---------------- kernel 2: attention + proj + LN2 + FFN ----------------
    out = pl.pallas_call(
        functools.partial(_attn_ffn_kernel, H=n_head, HS=HS),
        out_shape=jax.ShapeDtypeStruct((B, T_pad, C), f32),
        grid=(B, NT),
        in_specs=[
            pl.BlockSpec((None, TQ, C), lambda b, t: (b, t, 0)),    # x tile (residual)
            pl.BlockSpec((None, 1, T_pad), lambda b, t: (b, 0, 0)), # mask bias
            pl.BlockSpec((None, T_pad, C), lambda b, t: (b, 0, 0)), # K (full seq)
            pl.BlockSpec((None, T_pad, C), lambda b, t: (b, 0, 0)), # V (full seq)
            cs((1, C)), cs((1, C)),                                 # ln1 gamma/beta
            cs((C, C)),                                             # Wq (scale folded)
            cs((C, C)), cs((1, C)),                                 # Wproj, bproj
            cs((1, C)), cs((1, C)),                                 # ln2 gamma/beta
            cs((C, 4 * C)), cs((1, 4 * C)),                         # FFN W1, b1
            cs((4 * C, C)), cs((1, C)),                             # FFN W2, b2
        ],
        out_specs=pl.BlockSpec((None, TQ, C), lambda b, t: (b, t, 0)),
        compiler_params=pltpu.CompilerParams(
            dimension_semantics=("parallel", "parallel"),
            vmem_limit_bytes=_vmem_limit(_k2_bytes(TQ, T_pad, C))),
    )(x_p, mask_bias, k, v,
      params["g1"], params["be1"], wq,
      wp, params["bp"], params["g2"], params["be2"],
      w1, params["bf1"], w2, params["bf2"])

    return out[:, :T, :] if T_pad != T else out


def block_forward(x, attn_mask, params, *, n_head, q_tile=None):
    try:
        return _block_forward(x, attn_mask, params, n_head=n_head, q_tile=q_tile,
                              single_buffer_consts=True)
    except Exception:  # noqa: BLE001 - jax without BlockSpec pipeline_mode support
        return _block_forward(x, attn_mask, params, n_head=n_head, q_tile=q_tile,
                              single_buffer_consts=False)


# ---------------------------------------------------------------------------
# Pure-JAX f32 reference (mirrors the PyTorch forward, dropout = identity)
# ---------------------------------------------------------------------------
def block_reference(x, attn_mask, p, *, n_head):
    B, T, C = x.shape
    HS = C // n_head

    def ln(z, g, b):
        mu = z.mean(-1, keepdims=True)
        var = ((z - mu) ** 2).mean(-1, keepdims=True)
        return (z - mu) / jnp.sqrt(var + 1e-5) * g + b

    xn = ln(x, p["g1"], p["be1"])
    q = xn @ p["wq"]
    k = xn @ p["wk"]
    v = xn @ p["wv"]
    outs = []
    for h in range(n_head):
        sl = slice(h * HS, (h + 1) * HS)
        wei = jnp.einsum("btd,bsd->bts", q[..., sl], k[..., sl]) * C ** -0.5
        wei = jnp.where(attn_mask[:, None, :] == 0, -jnp.inf, wei)
        wei = jax.nn.softmax(wei, axis=-1)
        outs.append(jnp.einsum("bts,bsd->btd", wei, v[..., sl]))
    att = jnp.concatenate(outs, axis=-1)
    x = x + att @ p["wp"] + p["bp"]
    xn2 = ln(x, p["g2"], p["be2"])
    ff = jnp.maximum(xn2 @ p["w1"] + p["bf1"], 0.0) @ p["w2"] + p["bf2"]
    return x + ff


# ---------------------------------------------------------------------------
# Deterministic synthetic parameters (no checkpoint loading)
# ---------------------------------------------------------------------------
def make_params(key, C, n_head):
    s = 0.1
    ks = jax.random.split(key, 13)
    return dict(
        g1=1.0 + s * jax.random.normal(ks[0], (1, C), jnp.float32),
        be1=s * jax.random.normal(ks[1], (1, C), jnp.float32),
        wq=s * jax.random.normal(ks[2], (C, C), jnp.float32),
        wk=s * jax.random.normal(ks[3], (C, C), jnp.float32),
        wv=s * jax.random.normal(ks[4], (C, C), jnp.float32),
        wp=s * jax.random.normal(ks[5], (C, C), jnp.float32),
        bp=s * jax.random.normal(ks[6], (1, C), jnp.float32),
        g2=1.0 + s * jax.random.normal(ks[7], (1, C), jnp.float32),
        be2=s * jax.random.normal(ks[8], (1, C), jnp.float32),
        w1=s * jax.random.normal(ks[9], (C, 4 * C), jnp.float32),
        bf1=s * jax.random.normal(ks[10], (1, 4 * C), jnp.float32),
        w2=s * jax.random.normal(ks[11], (4 * C, C), jnp.float32),
        bf2=s * jax.random.normal(ks[12], (1, C), jnp.float32),
    )


if __name__ == "__main__":
    B, T, C, N_HEAD = 2, 16, 128, 4          # small, lane-dense demo shapes
    key = jax.random.PRNGKey(0)
    kx, kp = jax.random.split(key)

    x = jax.random.normal(kx, (B, T, C), jnp.float32)
    attn_mask = jnp.ones((B, T), jnp.float32).at[0, 12:].set(0.0)
    params = make_params(kp, C, N_HEAD)

    out = jax.block_until_ready(block_forward(x, attn_mask, params, n_head=N_HEAD))
    ref = block_reference(x, attn_mask, params, n_head=N_HEAD)
    assert out.shape == (B, T, C)
    # bf16 MXU operands + approx reciprocal => loosened tolerance vs f32 reference
    assert jnp.allclose(out, ref, atol=6e-2, rtol=6e-2), (
        f"max abs diff {jnp.max(jnp.abs(out - ref))}")

    # ragged-T case: exercises sequence tiling + host-side padding to a TQ multiple
    T2 = 40
    x2 = jax.random.normal(jax.random.PRNGKey(1), (B, T2, C), jnp.float32)
    mask2 = jnp.ones((B, T2), jnp.float32).at[1, 33:].set(0.0)
    out2 = jax.block_until_ready(
        block_forward(x2, mask2, params, n_head=N_HEAD, q_tile=16))
    ref2 = block_reference(x2, mask2, params, n_head=N_HEAD)
    assert out2.shape == (B, T2, C)
    assert jnp.allclose(out2, ref2, atol=6e-2, rtol=6e-2), (
        f"max abs diff {jnp.max(jnp.abs(out2 - ref2))}")

    print("KERNEL_OK")
</pallas_src>

<mosaic_0001>
module attributes {stable_mosaic.version = 11 : i64} {
  func.func @_ln_kv_kernel(%arg0: i32, %arg1: i32, %arg2: memref<1x16x128xf32, #tpu.memory_space<vmem>>, %arg3: memref<1x128xf32, #tpu.memory_space<vmem>>, %arg4: memref<1x128xf32, #tpu.memory_space<vmem>>, %arg5: memref<128x256xbf16, #tpu.memory_space<vmem>>, %arg6: memref<1x16x128xbf16, #tpu.memory_space<vmem>>, %arg7: memref<1x16x128xbf16, #tpu.memory_space<vmem>>) attributes {dimension_semantics = [#tpu.dimension_semantics<parallel>, #tpu.dimension_semantics<parallel>], iteration_bounds = array<i64: 2, 1>, scalar_prefetch = 0 : i64, scratch_operands = 0 : i64, tpu.core_type = #tpu.core_type<tc>, window_params = [{transform_indices = @transform_0, window_bounds = array<i64: 1, 16, 128>}, {pipeline_mode = #tpu.pipeline_mode<synchronous>, transform_indices = @transform_1, window_bounds = array<i64: 1, 128>}, {pipeline_mode = #tpu.pipeline_mode<synchronous>, transform_indices = @transform_2, window_bounds = array<i64: 1, 128>}, {pipeline_mode = #tpu.pipeline_mode<synchronous>, transform_indices = @transform_3, window_bounds = array<i64: 128, 256>}, {transform_indices = @transform_4, window_bounds = array<i64: 1, 16, 128>}, {transform_indices = @transform_5, window_bounds = array<i64: 1, 16, 128>}]} {
    %c0 = arith.constant 0 : index
    %c0_0 = arith.constant 0 : index
    %c0_1 = arith.constant 0 : index
    %0 = vector.load %arg2[%c0, %c0_0, %c0_1] : memref<1x16x128xf32, #tpu.memory_space<vmem>>, vector<1x16x128xf32>
    %1 = vector.shape_cast %0 : vector<1x16x128xf32> to vector<16x128xf32>
    %cst = arith.constant dense<0.000000e+00> : vector<16xf32>
    %2 = vector.multi_reduction <add>, %1, %cst [1] : vector<16x128xf32> to vector<16xf32>
    %3 = vector.shape_cast %2 : vector<16xf32> to vector<16x1xf32>
    %cst_2 = arith.constant 1.280000e+02 : f32
    %4 = vector.broadcast %cst_2 : f32 to vector<16x1xf32>
    %5 = arith.divf %3, %4 : vector<16x1xf32>
    %6 = vector.broadcast %5 : vector<16x1xf32> to vector<16x128xf32>
    %7 = arith.subf %1, %6 : vector<16x128xf32>
    %8 = arith.mulf %7, %7 : vector<16x128xf32>
    %cst_3 = arith.constant dense<0.000000e+00> : vector<16xf32>
    %9 = vector.multi_reduction <add>, %8, %cst_3 [1] : vector<16x128xf32> to vector<16xf32>
    %10 = vector.shape_cast %9 : vector<16xf32> to vector<16x1xf32>
    %cst_4 = arith.constant 1.280000e+02 : f32
    %11 = vector.broadcast %cst_4 : f32 to vector<16x1xf32>
    %12 = arith.divf %10, %11 : vector<16x1xf32>
    %13 = vector.broadcast %5 : vector<16x1xf32> to vector<16x128xf32>
    %14 = arith.subf %1, %13 : vector<16x128xf32>
    %cst_5 = arith.constant 9.99999974E-6 : f32
    %15 = vector.broadcast %cst_5 : f32 to vector<16x1xf32>
    %16 = arith.addf %12, %15 : vector<16x1xf32>
    %17 = math.rsqrt %16 : vector<16x1xf32>
    %18 = vector.broadcast %17 : vector<16x1xf32> to vector<16x128xf32>
    %19 = arith.mulf %14, %18 : vector<16x128xf32>
    %c0_6 = arith.constant 0 : index
    %c0_7 = arith.constant 0 : index
    %20 = vector.load %arg3[%c0_6, %c0_7] : memref<1x128xf32, #tpu.memory_space<vmem>>, vector<1x128xf32>
    %21 = vector.broadcast %20 : vector<1x128xf32> to vector<16x128xf32>
    %22 = arith.mulf %19, %21 : vector<16x128xf32>
    %c0_8 = arith.constant 0 : index
    %c0_9 = arith.constant 0 : index
    %23 = vector.load %arg4[%c0_8, %c0_9] : memref<1x128xf32, #tpu.memory_space<vmem>>, vector<1x128xf32>
    %24 = vector.broadcast %23 : vector<1x128xf32> to vector<16x128xf32>
    %25 = arith.addf %22, %24 : vector<16x128xf32>
    %26 = arith.truncf %25 : vector<16x128xf32> to vector<16x128xbf16>
    %c0_10 = arith.constant 0 : index
    %c0_11 = arith.constant 0 : index
    %27 = vector.load %arg5[%c0_10, %c0_11] : memref<128x256xbf16, #tpu.memory_space<vmem>>, vector<128x256xbf16>
    %cst_12 = arith.constant dense<0.000000e+00> : vector<16x256xf32>
    %28 = tpu.matmul %26, %27, %cst_12 {dimension_numbers = #tpu.dot_dimension_numbers<[1], [0], [0], [1], [0, 0, 1, 1], [], []>} : vector<16x128xbf16>, vector<128x256xbf16>, vector<16x256xf32> -> vector<16x256xf32>
    %29 = vector.extract_strided_slice %28 {offsets = [0, 0], sizes = [16, 128], strides = [1, 1]} : vector<16x256xf32> to vector<16x128xf32>
    %30 = arith.truncf %29 : vector<16x128xf32> to vector<16x128xbf16>
    %c0_13 = arith.constant 0 : index
    %c0_14 = arith.constant 0 : index
    %c0_15 = arith.constant 0 : index
    %31 = vector.load %arg6[%c0_13, %c0_14, %c0_15] : memref<1x16x128xbf16, #tpu.memory_space<vmem>>, vector<1x16x128xbf16>
    %32 = vector.shape_cast %31 : vector<1x16x128xbf16> to vector<16x128xbf16>
    %33 = vector.shape_cast %30 : vector<16x128xbf16> to vector<1x16x128xbf16>
    tpu.vector_store %arg6[%c0_13, %c0_14, %c0_15], %33 {strides = array<i32>} : memref<1x16x128xbf16, #tpu.memory_space<vmem>>, vector<1x16x128xbf16>,
    %34 = vector.extract_strided_slice %28 {offsets = [0, 128], sizes = [16, 128], strides = [1, 1]} : vector<16x256xf32> to vector<16x128xf32>
    %35 = arith.truncf %34 : vector<16x128xf32> to vector<16x128xbf16>
    %c0_16 = arith.constant 0 : index
    %c0_17 = arith.constant 0 : index
    %c0_18 = arith.constant 0 : index
    %36 = vector.load %arg7[%c0_16, %c0_17, %c0_18] : memref<1x16x128xbf16, #tpu.memory_space<vmem>>, vector<1x16x128xbf16>
    %37 = vector.shape_cast %36 : vector<1x16x128xbf16> to vector<16x128xbf16>
    %38 = vector.shape_cast %35 : vector<16x128xbf16> to vector<1x16x128xbf16>
    tpu.vector_store %arg7[%c0_16, %c0_17, %c0_18], %38 {strides = array<i32>} : memref<1x16x128xbf16, #tpu.memory_space<vmem>>, vector<1x16x128xbf16>,
    return
  }
  func.func @transform_0(%arg0: i32, %arg1: i32) -> (i32, i32, i32) {
    %c0_i32 = arith.constant 0 : i32
    %c0_i32_0 = arith.constant 0 : i32
    return %arg0, %arg1, %c0_i32 : i32, i32, i32
  }
  func.func @transform_1(%arg0: i32, %arg1: i32) -> (i32, i32) {
    %c0_i32 = arith.constant 0 : i32
    %c0_i32_0 = arith.constant 0 : i32
    %c0_i32_1 = arith.constant 0 : i32
    return %c0_i32, %c0_i32_0 : i32, i32
  }
  func.func @transform_2(%arg0: i32, %arg1: i32) -> (i32, i32) {
    %c0_i32 = arith.constant 0 : i32
    %c0_i32_0 = arith.constant 0 : i32
    %c0_i32_1 = arith.constant 0 : i32
    return %c0_i32, %c0_i32_0 : i32, i32
  }
  func.func @transform_3(%arg0: i32, %arg1: i32) -> (i32, i32) {
    %c0_i32 = arith.constant 0 : i32
    %c0_i32_0 = arith.constant 0 : i32
    %c0_i32_1 = arith.constant 0 : i32
    return %c0_i32, %c0_i32_0 : i32, i32
  }
  func.func @transform_4(%arg0: i32, %arg1: i32) -> (i32, i32, i32) {
    %c0_i32 = arith.constant 0 : i32
    %c0_i32_0 = arith.constant 0 : i32
    return %arg0, %arg1, %c0_i32 : i32, i32, i32
  }
  func.func @transform_5(%arg0: i32, %arg1: i32) -> (i32, i32, i32) {
    %c0_i32 = arith.constant 0 : i32
    %c0_i32_0 = arith.constant 0 : i32
    return %arg0, %arg1, %c0_i32 : i32, i32, i32
  }
}

module attributes {stable_mosaic.version = 11 : i64} {
  func.func @_ln_kv_kernel(%arg0: i32, %arg1: i32, %arg2: memref<1x16x128xf32, #tpu.memory_space<vmem>>, %arg3: memref<1x128xf32, #tpu.memory_space<vmem>>, %arg4: memref<1x128xf32, #tpu.memory_space<vmem>>, %arg5: memref<128x256xbf16, #tpu.memory_space<vmem>>, %arg6: memref<1x16x128xbf16, #tpu.memory_space<vmem>>, %arg7: memref<1x16x128xbf16, #tpu.memory_space<vmem>>) attributes {dimension_semantics = [#tpu.dimension_semantics<parallel>, #tpu.dimension_semantics<parallel>], iteration_bounds = array<i64: 2, 1>, scalar_prefetch = 0 : i64, scratch_operands = 0 : i64, tpu.core_type = #tpu.core_type<tc>, window_params = [{transform_indices = @transform_0, window_bounds = array<i64: 1, 16, 128>}, {pipeline_mode = #tpu.pipeline_mode<synchronous>, transform_indices = @transform_1, window_bounds = array<i64: 1, 128>}, {pipeline_mode = #tpu.pipeline_mode<synchronous>, transform_indices = @transform_2, window_bounds = array<i64: 1, 128>}, {pipeline_mode = #tpu.pipeline_mode<synchronous>, transform_indices = @transform_3, window_bounds = array<i64: 128, 256>}, {transform_indices = @transform_4, window_bounds = array<i64: 1, 16, 128>}, {transform_indices = @transform_5, window_bounds = array<i64: 1, 16, 128>}]} {
    %c0 = arith.constant 0 : index
    %c0_0 = arith.constant 0 : index
    %c0_1 = arith.constant 0 : index
    %0 = vector.load %arg2[%c0, %c0_0, %c0_1] : memref<1x16x128xf32, #tpu.memory_space<vmem>>, vector<1x16x128xf32>
    %1 = vector.shape_cast %0 : vector<1x16x128xf32> to vector<16x128xf32>
    %cst = arith.constant dense<0.000000e+00> : vector<16xf32>
    %2 = vector.multi_reduction <add>, %1, %cst [1] : vector<16x128xf32> to vector<16xf32>
    %3 = vector.shape_cast %2 : vector<16xf32> to vector<16x1xf32>
    %cst_2 = arith.constant 1.280000e+02 : f32
    %4 = vector.broadcast %cst_2 : f32 to vector<16x1xf32>
    %5 = arith.divf %3, %4 : vector<16x1xf32>
    %6 = vector.broadcast %5 : vector<16x1xf32> to vector<16x128xf32>
    %7 = arith.subf %1, %6 : vector<16x128xf32>
    %8 = arith.mulf %7, %7 : vector<16x128xf32>
    %cst_3 = arith.constant dense<0.000000e+00> : vector<16xf32>
    %9 = vector.multi_reduction <add>, %8, %cst_3 [1] : vector<16x128xf32> to vector<16xf32>
    %10 = vector.shape_cast %9 : vector<16xf32> to vector<16x1xf32>
    %cst_4 = arith.constant 1.280000e+02 : f32
    %11 = vector.broadcast %cst_4 : f32 to vector<16x1xf32>
    %12 = arith.divf %10, %11 : vector<16x1xf32>
    %13 = vector.broadcast %5 : vector<16x1xf32> to vector<16x128xf32>
    %14 = arith.subf %1, %13 : vector<16x128xf32>
    %cst_5 = arith.constant 9.99999974E-6 : f32
    %15 = vector.broadcast %cst_5 : f32 to vector<16x1xf32>
    %16 = arith.addf %12, %15 : vector<16x1xf32>
    %17 = math.rsqrt %16 : vector<16x1xf32>
    %18 = vector.broadcast %17 : vector<16x1xf32> to vector<16x128xf32>
    %19 = arith.mulf %14, %18 : vector<16x128xf32>
    %c0_6 = arith.constant 0 : index
    %c0_7 = arith.constant 0 : index
    %20 = vector.load %arg3[%c0_6, %c0_7] : memref<1x128xf32, #tpu.memory_space<vmem>>, vector<1x128xf32>
    %21 = vector.broadcast %20 : vector<1x128xf32> to vector<16x128xf32>
    %22 = arith.mulf %19, %21 : vector<16x128xf32>
    %c0_8 = arith.constant 0 : index
    %c0_9 = arith.constant 0 : index
    %23 = vector.load %arg4[%c0_8, %c0_9] : memref<1x128xf32, #tpu.memory_space<vmem>>, vector<1x128xf32>
    %24 = vector.broadcast %23 : vector<1x128xf32> to vector<16x128xf32>
    %25 = arith.addf %22, %24 : vector<16x128xf32>
    %26 = arith.truncf %25 : vector<16x128xf32> to vector<16x128xbf16>
    %c0_10 = arith.constant 0 : index
    %c0_11 = arith.constant 0 : index
    %27 = vector.load %arg5[%c0_10, %c0_11] : memref<128x256xbf16, #tpu.memory_space<vmem>>, vector<128x256xbf16>
    %cst_12 = arith.constant dense<0.000000e+00> : vector<16x256xf32>
    %28 = tpu.matmul %26, %27, %cst_12 {dimension_numbers = #tpu.dot_dimension_numbers<[1], [0], [0], [1], [0, 0, 1, 1], [], []>} : vector<16x128xbf16>, vector<128x256xbf16>, vector<16x256xf32> -> vector<16x256xf32>
    %29 = vector.extract_strided_slice %28 {offsets = [0, 0], sizes = [16, 128], strides = [1, 1]} : vector<16x256xf32> to vector<16x128xf32>
    %30 = arith.truncf %29 : vector<16x128xf32> to vector<16x128xbf16>
    %c0_13 = arith.constant 0 : index
    %c0_14 = arith.constant 0 : index
    %c0_15 = arith.constant 0 : index
    %31 = vector.load %arg6[%c0_13, %c0_14, %c0_15] : memref<1x16x128xbf16, #tpu.memory_space<vmem>>, vector<1x16x128xbf16>
    %32 = vector.shape_cast %31 : vector<1x16x128xbf16> to vector<16x128xbf16>
    %33 = vector.shape_cast %30 : vector<16x128xbf16> to vector<1x16x128xbf16>
    tpu.vector_store %arg6[%c0_13, %c0_14, %c0_15], %33 {strides = array<i32>} : memref<1x16x128xbf16, #tpu.memory_space<vmem>>, vector<1x16x128xbf16>,
    %34 = vector.extract_strided_slice %28 {offsets = [0, 128], sizes = [16, 128], strides = [1, 1]} : vector<16x256xf32> to vector<16x128xf32>
    %35 = arith.truncf %34 : vector<16x128xf32> to vector<16x128xbf16>
    %c0_16 = arith.constant 0 : index
    %c0_17 = arith.constant 0 : index
    %c0_18 = arith.constant 0 : index
    %36 = vector.load %arg7[%c0_16, %c0_17, %c0_18] : memref<1x16x128xbf16, #tpu.memory_space<vmem>>, vector<1x16x128xbf16>
    %37 = vector.shape_cast %36 : vector<1x16x128xbf16> to vector<16x128xbf16>
    %38 = vector.shape_cast %35 : vector<16x128xbf16> to vector<1x16x128xbf16>
    tpu.vector_store %arg7[%c0_16, %c0_17, %c0_18], %38 {strides = array<i32>} : memref<1x16x128xbf16, #tpu.memory_space<vmem>>, vector<1x16x128xbf16>,
    return
  }
  func.func @transform_0(%arg0: i32, %arg1: i32) -> (i32, i32, i32) {
    %c0_i32 = arith.constant 0 : i32
    %c0_i32_0 = arith.constant 0 : i32
    return %arg0, %arg1, %c0_i32 : i32, i32, i32
  }
  func.func @transform_1(%arg0: i32, %arg1: i32) -> (i32, i32) {
    %c0_i32 = arith.constant 0 : i32
    %c0_i32_0 = arith.constant 0 : i32
    %c0_i32_1 = arith.constant 0 : i32
    return %c0_i32, %c0_i32_0 : i32, i32
  }
  func.func @transform_2(%arg0: i32, %arg1: i32) -> (i32, i32) {
    %c0_i32 = arith.constant 0 : i32
    %c0_i32_0 = arith.constant 0 : i32
    %c0_i32_1 = arith.constant 0 : i32
    return %c0_i32, %c0_i32_0 : i32, i32
  }
  func.func @transform_3(%arg0: i32, %arg1: i32) -> (i32, i32) {
    %c0_i32 = arith.constant 0 : i32
    %c0_i32_0 = arith.constant 0 : i32
    %c0_i32_1 = arith.constant 0 : i32
    return %c0_i32, %c0_i32_0 : i32, i32
  }
  func.func @transform_4(%arg0: i32, %arg1: i32) -> (i32, i32, i32) {
    %c0_i32 = arith.constant 0 : i32
    %c0_i32_0 = arith.constant 0 : i32
    return %arg0, %arg1, %c0_i32 : i32, i32, i32
  }
  func.func @transform_5(%arg0: i32, %arg1: i32) -> (i32, i32, i32) {
    %c0_i32 = arith.constant 0 : i32
    %c0_i32_0 = arith.constant 0 : i32
    return %arg0, %arg1, %c0_i32 : i32, i32, i32
  }
}

</mosaic_0001>

<bundles_post_ra>
// kernel: tpu_custom_call.1
= control target key start
LH: loop header
LB: loop body
LE: loop exit
PB: predicated region body
PF: predicated region fallthrough
CT: control target
= control target key end

     0   :  { %s1350_s0 = inlined_call_operand.hbm [shape: f32[2,16,128], index: 0, kind: input, shape index: {}]   ;;  %s1351_s1 = inlined_call_operand.hbm [shape: f32[1,128], index: 1, kind: input, shape index: {}]   ;;  %s1352_s2 = inlined_call_operand.vmem [shape: f32[1,128], index: 2, kind: input, shape index: {}]   ;;  %s1353_s3 = inlined_call_operand.hbm [shape: bf16[128,256], index: 3, kind: input, shape index: {}]   ;;  %s1354_s4 = inlined_call_operand.hbm [shape: bf16[2,16,128], index: 4, kind: output, shape index: {0}]   ;;  %s1355_s5 = inlined_call_operand.hbm [shape: bf16[2,16,128], index: 5, kind: output, shape index: {1}]  }
   0x1   :  { %1358 = sst [smem:[#allocation16_spill]] %s1351_s1 }
   0x2   :  { %1359 = sst [smem:[#allocation17_spill]] %s1353_s3 }
   0x3   :  { %11 = vsyncpa [#allocation3], 0 }
   0x4   :  { %13 = vsyncpa [#allocation3 + $0x1], 0 }
   0x5   :  { %14 = vsyncpa [#allocation6], 0 }
   0x6   :  { %15 = vsyncpa [#allocation4], 0 }
   0x7   :  { %17 = vsyncpa [#allocation4 + $0x1], 0 }
   0x8   :  { %18 = vsyncpa [#allocation10], 0 }
   0x9   :  { %20 = vsyncpa [#allocation10 + $0x1], 0  ;;  %s1152_s18 = smov 0   ;;  %s1154_s19 = smov 0  }
   0xa   :  { %s1156_s20 = smov 0   ;;  %s1158_s21 = smov 0  }
   0xb   :  { %s1160_s22 = smov 0   ;;  %s1162_s23 = smov 0  }
   0xc LB: > { %1360 = sst [smem:[#allocation15_spill]] %s1113_s23  ;;  %s688_s24 = sadd.s32 4294967295, %s1113_s23   ;;  %s1113_s23 = sphi %s1162_s23, %s1377_s23   ;;  %s1109_s22 = sphi %s1160_s22, %s1376_s22   ;;  %s1105_s21 = sphi %s1158_s21, %s1375_s21   ;;  %s1101_s20 = sphi %s1156_s20, %s1374_s20   ;;  %s1097_s19 = sphi %s1154_s19, %s1373_s19   ;;  %s1093_s18 = sphi %s1152_s18, %s1372_s18  }
   0xd   : > { %s689_s25 = sadd.s32 4294967294, %s1113_s23   ;;  %p54_p0 = scmp.ne.s32.totalorder %s1101_s20, %s1097_s19 }
   0xe   : > { %p55_p1 = scmp.eq.s32.totalorder %s1113_s23, 0  ;;  %p60_p2 = scmp.ne.s32.totalorder %s1097_s19, %s1093_s18 }
   0xf   : > { %p1190_p3 = scmp.eq.s32.totalorder %s688_s24, 0  ;;  %p149_p4 = scmp.eq.s32.totalorder %s688_s24, 1 }
  0x10   : > { %p1194_p5 = por %p55_p1, %p54_p0  ;;  %p155_p6 = scmp.eq.s32.totalorder %s689_s25, 1 }
  0x11   : > { %p1200_p7 = por %p1190_p3, %p60_p2  ;;  %p1204_p8 = por %p149_p4, %p54_p0 }
  0x12   : > { %p1208_p9 = por %p155_p6, %p60_p2  ;;  %p690_p10 = scmp.ge.s32.totalorder %s1113_s23, 1 }
  0x13   : > { %p190_p11 = scmp.lt.s32.totalorder %s1113_s23, 3  ;;  %s1366_s1 = sld [smem:[#allocation16_spill]] }
  0x14   : > { %s1115_s11 = smov [#allocation5]   ;;  %p693_p13 = scmp.ge.s32.totalorder %s1113_s23, 2 }
  0x15   : > { %p1217_p12 = pnand %p690_p10, %p190_p11  ;;  %s204_s12 = sshll.u32 %s1115_s11, 4  ;;  %s205_s12 = int_to_ptr.vmem [resolvable:$true] %s204_s12 }
  0x16   : > { %p838_p1 = scmp.lt.s32.totalorder %s1113_s23, 2  ;;  %s1368_s3 = sld [smem:[#allocation17_spill]] }
  0x17   : > { %p818_p0 = pneg %p1217_p12  ;;  %s1116_s17 = smov [#allocation7]  }
  0x18   : > { %p1232_p4 = pnand %p838_p1, %p1194_p5  ;;  %s218_s24 = sshll.u32 %s1116_s17, 4  ;;  %s219_s24 = int_to_ptr.vmem [resolvable:$true] %s218_s24 }
  0x19   : > { %s202_s9 = sshll.u32 %s1366_s1, 4  ;;  %p819_p2 = pnand %p818_p0, %p1190_p3  ;;  %s203_s9 = int_to_ptr.hbm [resolvable:$true] %s202_s9 }
  0x1a   : > { %s1117_s25 = smov 128   ;;  %s1118_s7 = smov 8  }
  0x1b   : > { %821 = dma.hbm_to_vmem [thread:$0]  (!%p819_p2), %s203_s9, 16, %s205_s12, [#allocation6]  }
  0x1c   : > { %s216_s15 = sshll.u32 %s1368_s3, 4  ;;  %s232_s8 = sand.u32 1, %s1101_s20   ;;  %s217_s15 = int_to_ptr.hbm [resolvable:$true] %s216_s15 }
  0x1d   : > { %824 = dma.hbm_to_vmem [thread:$0]  (!%p819_p2), %s217_s15, 2048, %s219_s24, [#allocation6], %s1117_s25, %s1117_s25, %s1118_s7  }
  0x1e   : > { %s38_s11 = sadd.s32 1, %s1109_s22  ;;  %s694_s13 = sshll.u32 %s232_s8, 4 }
  0x1f   : > { %p40_p6 = scmp.ge.s32.totalorder %s38_s11, 2  ;;  %s775_s28 = sshll.u32 %s1109_s22, 4 }
  0x20   : > { %s236_s14 = scalar_lea.vmem [#allocation2], %s694_s13  ;;  %s243_s9 = scalar_lea.hbm %s1350_s0, %s775_s28 }
  0x21   : > { %s246_s26 = sshll.u32 %s236_s14, 4  ;;  %s1379_s11 = smov (%p40_p6, %s38_s11), 0  ;;  %s247_s26 = int_to_ptr.vmem [resolvable:$true] %s246_s26 }
  0x22   : > { %s42_s12 = ssub.s32 %s1109_s22, %s1379_s11  ;;  %s244_s15 = sshll.u32 %s243_s9, 4  ;;  %s245_s15 = int_to_ptr.hbm [resolvable:$true] %s244_s15 }
  0x23   : > { %p45_p5 = scmp.eq.s32.totalorder %s42_s12, 0  ;;  %s233_s24 = scalar_lea.sflag [#allocation3], %s232_s8 }
  0x24   : > { %828 = dma.hbm_to_vmem [thread:$0]  (!%p1232_p4), %s245_s15, 256, %s247_s26, %s233_s24, %s1117_s25, %s1117_s25, %s1118_s7  }
  0x25   : > { %s1370_s3 = sadd.s32 1, %s1101_s20  ;;  %258 = sbr.rel (%p1217_p12) target bundleno = 475 (0x1db), region = 36 }
  0x26   : > { %s1251_s23 = scalar_select %p45_p5, %s1101_s20, %s1370_s3  }
  0x27   : > { %s1256_s13 = sand.u32 (!%p1217_p12), 1, %s1097_s19  }
  0x28   : > { %s698_s1 = sshll.u32 (!%p1217_p12), %s1256_s13, 4  ;;  %s261_s28 = scalar_lea.sflag (!%p1217_p12), [#allocation3], %s1256_s13 }
  0x29   : > { %s264_s14 = scalar_lea.vmem (!%p1217_p12), [#allocation2], %s698_s1 }
  0x2a   : > { %1076 = dma.done.wait (%p1200_p7), %s261_s28, 256  }
  0x2b   : > { %1078 = vsyncadd (%p1200_p7), %s261_s28, 4294967040 }
  0x2c   : > { %1080 = dma.done.wait (%p1190_p3), [#allocation6], 2064  }
  0x2d   : > { %1082 = vsyncadd (%p1190_p3), [#allocation6], 4294965232  ;;  %v310_v0 = vld [vmem:[%s264_s14] sm:$0xff]  ;;  %v311_v1 = vld [vmem:[%s264_s14 + $0x8] sm:$0xff]  ;;  %v1119_v2 = vmov 128.0   ;;  %s701_s27 = sshll.u32 %s1256_s13, 3 }
  0x2e   : > { %312 = vadd.xlane.f32.xlu0 %v310_v0  ;;  %899 = vrcp.f32 %v1119_v2  ;;  %v761_v17 = vld [vmem:[#allocation7 + $0x70] sm:$0xf]  ;;  %v791_v18 = vld [vmem:[#allocation7 + $0x74] sm:$0xf0]  ;;  %v790_v19 = vld [vmem:[#allocation7 + $0x74] sm:$0xf] }
  0x2f   : > { %v762_v20 = vor.u32 %v791_v18, %v761_v17  ;;  %v763_v21 = vld [vmem:[#allocation7 + $0x78] sm:$0xf0]  ;;  %v753_v23 = vld [vmem:[#allocation7 + $0x60] sm:$0xf]  ;;  %v789_v24 = vld [vmem:[#allocation7 + $0x64] sm:$0xf0] }
  0x30   : > { %v766_v22 = vor.u32 %v790_v19, %v763_v21  ;;  %v788_v25 = vld [vmem:[#allocation7 + $0x64] sm:$0xf]  ;;  %v754_v26 = vor.u32 %v789_v24, %v753_v23  ;;  %v755_v27 = vld [vmem:[#allocation7 + $0x68] sm:$0xf0]  ;;  %v745_v29 = vld [vmem:[#allocation7 + $0x50] sm:$0xf] }
  0x31   : > { %468 = vmatpush.bf16.msra.mxu0 %v762_v20  ;;  %v758_v28 = vor.u32 %v788_v25, %v755_v27  ;;  %v787_v30 = vld [vmem:[#allocation7 + $0x54] sm:$0xf0]  ;;  %v786_v31 = vld [vmem:[#allocation7 + $0x54] sm:$0xf]  ;;  %v747_v33 = vld [vmem:[#allocation7 + $0x58] sm:$0xf0] }
  0x32   : > { %482 = vmatpush.bf16.msra.mxu1 %v766_v22  ;;  %v746_v32 = vor.u32 %v787_v30, %v745_v29  ;;  %v750_v34 = vor.u32 %v786_v31, %v747_v33  ;;  %v737_v35 = vld [vmem:[#allocation7 + $0x40] sm:$0xf]  ;;  %v785_v36 = vld [vmem:[#allocation7 + $0x44] sm:$0xf0]  ;;  %v784_v37 = vld [vmem:[#allocation7 + $0x44] sm:$0xf] }
  0x33   : > { %v738_v38 = vor.u32 %v785_v36, %v737_v35  ;;  %v739_v39 = vld [vmem:[#allocation7 + $0x48] sm:$0xf0]  ;;  %v729_v41 = vld [vmem:[#allocation7 + $0x30] sm:$0xf]  ;;  %v783_v42 = vld [vmem:[#allocation7 + $0x34] sm:$0xf0] }
  0x34   : > { %v900_v3 = vpop.eup %899  ;;  %v742_v40 = vor.u32 %v784_v37, %v739_v39  ;;  %v782_v43 = vld [vmem:[#allocation7 + $0x34] sm:$0xf]  ;;  %v730_v44 = vor.u32 %v783_v42, %v729_v41  ;;  %v731_v45 = vld [vmem:[#allocation7 + $0x38] sm:$0xf0]  ;;  %v721_v47 = vld [vmem:[#allocation7 + $0x20] sm:$0xf] }
  0x35   : > { %v317_v4 = vmul.f32 128.0, %v900_v3  ;;  %vm321_vm0 = vweird.f32 %v900_v3  ;;  %469 = vmatpush.bf16.msra.mxu0 %v754_v26  ;;  %v734_v46 = vor.u32 %v782_v43, %v731_v45  ;;  %v781_v48 = vld [vmem:[#allocation7 + $0x24] sm:$0xf0]  ;;  %v780_v49 = vld [vmem:[#allocation7 + $0x24] sm:$0xf]  ;;  %s792_s29 = sshll.u32 %s1105_s21, 3 }
  0x36   : > { %314 = vadd.xlane.f32.xlu0 %v311_v1  ;;  %483 = vmatpush.bf16.msra.mxu1 %v758_v28  ;;  %v722_v50 = vor.u32 %v781_v48, %v721_v47  ;;  %v723_v51 = vld [vmem:[#allocation7 + $0x28] sm:$0xf0]  ;;  %v713_v53 = vld [vmem:[#allocation7 + $0x10] sm:$0xf]  ;;  %v779_v54 = vld [vmem:[#allocation7 + $0x14] sm:$0xf0]  ;;  %s523_s8 = scalar_lea.hbm %s1354_s4, %s792_s29  ;;  %s542_s24 = scalar_lea.hbm %s1355_s5, %s792_s29 }
  0x37   : > { %v318_v5 = vsub.f32 1.0, %v317_v4  ;;  %v726_v52 = vor.u32 %v780_v49, %v723_v51  ;;  %v778_v55 = vld [vmem:[#allocation7 + $0x14] sm:$0xf]  ;;  %v714_v56 = vor.u32 %v779_v54, %v713_v53  ;;  %v715_v57 = vld [vmem:[#allocation7 + $0x18] sm:$0xf0]  ;;  %s299_s10 = scalar_lea.vmem [#allocation8], %s701_s27 }
  0x38   : > { %v705_v58 = vld [vmem:[#allocation7] sm:$0xf]  ;;  %v777_v59 = vld [vmem:[#allocation7 + $0x4] sm:$0xf0]  ;;  %v718_v60 = vor.u32 %v778_v55, %v715_v57  ;;  %v776_v61 = vld [vmem:[#allocation7 + $0x4] sm:$0xf] }
  0x39   : > { %v319_v6 = vmul.f32 %v900_v3, %v318_v5  ;;  %470 = vmatpush.bf16.msra.mxu0 %v746_v32  ;;  %v707_v62 = vld [vmem:[#allocation7 + $0x8] sm:$0xf0]  ;;  %v897_v22 = vld [vmem:[#allocation5] ss:$0 sm:$0xff]  ;;  %s524_s16 = sshll.u32 %s299_s10, 4  ;;  %s306_s17 = scalar_lea.vmem [#allocation9], %s701_s27  ;;  %s1295_s16 = int_to_ptr.vmem [resolvable:$true] %s524_s16 }
  0x3a   : > { %484 = vmatpush.bf16.msra.mxu1 %v750_v34  ;;  %v710_v2 = vor.u32 %v776_v61, %v707_v62  ;;  %v898_v27 = vld [vmem:[%s1352_s2] ss:$0 sm:$0xff]  ;;  %s543_s9 = sshll.u32 %s306_s17, 4  ;;  %s526_s1 = sshll.u32 %s523_s8, 4  ;;  %s1297_s9 = int_to_ptr.vmem [resolvable:$true] %s543_s9  ;;  %s527_s1 = int_to_ptr.hbm [resolvable:$true] %s526_s1 }
  0x3b   : > { %v320_v7 = vadd.f32 %v900_v3, %v319_v6  ;;  %s545_s21 = sshll.u32 %s542_s24, 4  ;;  %s505_s28 = scalar_lea.sflag [#allocation4], %s1256_s13  ;;  %s1299_s21 = int_to_ptr.hbm [resolvable:$true] %s545_s21 }
  0x3c   : > { %s1009_s14 = sshra.s32 %s527_s1, 4  ;;  %s1015_s29 = scalar_lea.hbm %s1354_s4, 16  ;;  %s1010_s14 = int_to_ptr.hbm [resolvable:$true] %s1009_s14 }
  0x3d   : > { %v1268_v8 = vsel %vm321_vm0, %v900_v3, %v320_v7  ;;  %471 = vmatpush.bf16.msra.mxu0 %v738_v38  ;;  %s1011_s3 = scalar_lea.hbm %s1010_s14, 8  ;;  %p1016_p11 = scmp.lt.s32.totalorder %s1010_s14, %s1354_s4 }
  0x3e   : > { %485 = vmatpush.bf16.msra.mxu1 %v742_v40  ;;  %p1012_p3 = scmp.ne.s32.totalorder %s1010_s14, %s1011_s3  ;;  %p1017_p12 = scmp.lt.s32.totalorder %s1015_s29, %s1011_s3 }
  0x40   : > { %p1013_p7 = pnand %p1012_p3, %p1204_p8  ;;  %p1018_p0 = por %p1017_p12, %p1016_p11 }
  0x41   : > { %472 = vmatpush.bf16.msra.mxu0 %v730_v44 }
  0x42   : > { %486 = vmatpush.bf16.msra.mxu1 %v734_v46  ;;  %p1014_p10 = pneg %p1013_p7 }
  0x44   : > { %p1019_p1 = pnand %p1018_p0, %p1014_p10 }
  0x45   : > { %473 = vmatpush.bf16.msra.mxu0 %v722_v50 }
  0x46   : > { %487 = vmatpush.bf16.msra.mxu1 %v726_v52 }
  0x49   : > { %474 = vmatpush.bf16.msra.mxu0 %v714_v56 }
  0x4a   : > { %488 = vmatpush.bf16.msra.mxu1 %v718_v60 }
  0x4e   : > { %489 = vmatpush.bf16.msra.mxu1 %v710_v2 }
  0xa1   : > { %v313_v9 = vpop.xlane.xlu0 %312 }
  0xa2   : > { %v323_v10 = vmul.f32 %v1268_v8, %v313_v9 }
  0xa4   : > { %v1271_v11 = vsub.f32 %v310_v0, %v323_v10  ;;  %v706_v0 = vor.u32 %v777_v59, %v705_v58 }
  0xa6   : > { %v327_v12 = vmul.f32 %v1271_v11, %v1271_v11  ;;  %475 = vmatpush.bf16.msra.mxu0 %v706_v0 }
  0xa8   : > { %329 = vadd.xlane.f32.xlu1 %v327_v12 }
  0xa9   : > { %v315_v13 = vpop.xlane.xlu0 %314 }
  0xaa   : > { %v324_v14 = vmul.f32 %v1268_v8, %v315_v13 }
  0xac   : > { %v1276_v15 = vsub.f32 %v311_v1, %v324_v14 }
  0xae   : > { %v328_v16 = vmul.f32 %v1276_v15, %v1276_v15 }
  0xb0   : > { %331 = vadd.xlane.f32.xlu1 %v328_v16 }
 0x11b   : > { %v330_v63 = vpop.xlane.xlu1 %329 }
 0x11c   : > { %v333_v1 = vmul.f32 %v330_v63, %v1268_v8 }
 0x11e   : > { %v335_v3 = vadd.f32 1e-05, %v333_v1 }
 0x120   : > { %901 = vrsqrt.f32 %v335_v3  ;;  %vm343_vm2 = vweird.f32 %v335_v3 }
 0x123   : > { %v332_v4 = vpop.xlane.xlu1 %331 }
 0x124   : > { %v334_v5 = vmul.f32 %v332_v4, %v1268_v8 }
 0x126   : > { %v902_v6 = vpop.eup %901  ;;  %v336_v7 = vadd.f32 1e-05, %v334_v5 }
 0x127   : > { %v338_v9 = vmul.f32 %v902_v6, %v335_v3  ;;  %vm344_vm1 = vweird.f32 %v902_v6 }
 0x128   : > { %903 = vrsqrt.f32 %v336_v7  ;;  %vm345_vm3 = vmor %vm343_vm2, %vm344_vm1  ;;  %vm353_vm5 = vweird.f32 %v336_v7 }
 0x129   : > { %v339_v10 = vmul.f32 %v902_v6, %v338_v9 }
 0x12b   : > { %v340_v12 = vmul.f32 0.5, %v339_v10 }
 0x12d   : > { %v341_v13 = vsub.f32 1.5, %v340_v12 }
 0x12e   : > { %v904_v14 = vpop.eup %903 }
 0x12f   : > { %v342_v16 = vmul.f32 %v902_v6, %v341_v13  ;;  %v348_v17 = vmul.f32 %v904_v14, %v336_v7  ;;  %vm354_vm4 = vweird.f32 %v904_v14 }
 0x130   : > { %vm355_vm6 = vmor %vm353_vm5, %vm354_vm4 }
 0x131   : > { %v349_v18 = vmul.f32 %v904_v14, %v348_v17  ;;  %v346_v20 = vsel %vm345_vm3, %v902_v6, %v342_v16 }
 0x132   : > { %v357_v8 = vmul.f32 %v346_v20, %v1271_v11 }
 0x133   : > { %v350_v19 = vmul.f32 0.5, %v349_v18 }
 0x134   : > { %v363_v26 = vmul.f32 %v897_v22, %v357_v8 }
 0x135   : > { %v351_v21 = vsub.f32 1.5, %v350_v19 }
 0x136   : > { %v369_v29 = vadd.f32 %v898_v27, %v363_v26 }
 0x137   : > { %v352_v23 = vmul.f32 %v904_v14, %v351_v21 }
 0x139   : > { %v356_v24 = vsel %vm355_vm6, %v904_v14, %v352_v23 }
 0x13a   : > { %v358_v25 = vmul.f32 %v356_v24, %v1276_v15 }
 0x13c   : > { %v364_v28 = vmul.f32 %v897_v22, %v358_v25 }
 0x13e   : > { %v370_v30 = vadd.f32 %v898_v27, %v364_v28 }
 0x140   : > { %v371_v31 = vpack.c.bf16 %v370_v30, %v369_v29 }
 0x142   : > { %476 = vmatmul.bf16.vlgmr.msra.gmra.mxu0 %v371_v31  ;;  %490 = vmatmul.bf16.vlgmr.msra.gmra.mxu1 %v371_v31 }
 0x1bf   : > { %v477_v11 = vpop.f32.mrf.mxu0  ;;  %v491_v32 = vpop.f32.mrf.mxu1 }
 0x1c7   : > { %v479_v15 = vpop.f32.mrf.mxu0  ;;  %v493_v33 = vpop.f32.mrf.mxu1 }
 0x1c8   : > { %v797_v34 = vpack.c.bf16 %v479_v15, %v477_v11  ;;  %v802_v35 = vpack.c.bf16 %v493_v33, %v491_v32 }
 0x1ca   : > { %798 = vst [vmem:[%s299_s10] sm:$0xff] %v797_v34  }
 0x1cb   : > { %803 = vst [vmem:[%s306_s17] sm:$0xff] %v802_v35  }
 0x1cc   : > { %1022 = shalt.err (!%p1019_p1)
}
 0x1cd   : > { %s1120_s10 = smov 64   ;;  %s1121_s8 = smov 4  }
 0x1ce   : > { %814 = dma.vmem_to_hbm [thread:$0]  (%p1204_p8), %s1295_s16, 128, %s527_s1, %s505_s28, %s1120_s10, %s1120_s10, %s1121_s8  }
 0x1cf   : > { %s510_s17 = scalar_lea.sflag [#allocation10], %s1256_s13  ;;  %s1037_s12 = sshra.s32 %s1299_s21, 4  ;;  %s1038_s12 = int_to_ptr.hbm [resolvable:$true] %s1037_s12 }
 0x1d0   : > { %s1039_s15 = scalar_lea.hbm %s1038_s12, 8  ;;  %s1043_s3 = scalar_lea.hbm %s1355_s5, 16 }
 0x1d1   : > { %p1040_p2 = scmp.ne.s32.totalorder %s1038_s12, %s1039_s15  ;;  %p1044_p5 = scmp.lt.s32.totalorder %s1038_s12, %s1355_s5 }
 0x1d2   : > { %p1045_p3 = scmp.lt.s32.totalorder %s1043_s3, %s1039_s15 }
 0x1d3   : > { %p1041_p4 = pnand %p1040_p2, %p1204_p8 }
 0x1d4   : > { %p1046_p7 = por %p1045_p3, %p1044_p5 }
 0x1d5   : > { %p1042_p6 = pneg %p1041_p4 }
 0x1d7   : > { %p1047_p10 = pnand %p1046_p7, %p1042_p6 }
 0x1d9   : > { %1050 = shalt.err (!%p1047_p10)
}
 0x1da   : > { %815 = dma.vmem_to_hbm [thread:$0]  (%p1204_p8), %s1297_s9, 128, %s1299_s21, %s510_s17, %s1120_s10, %s1120_s10, %s1121_s8  }
 0x1db PF: > { %s1371_s13 = sld [smem:[#allocation15_spill]]  ;;  %s560_s16 = sand.u32 1, %s1093_s18  }
 0x1dc   : > { %p830_p11 = pnand %p693_p13, %p1208_p9  ;;  %s561_s1 = scalar_lea.sflag [#allocation4], %s560_s16 }
 0x1de   : > { %p831_p12 = pneg %p830_p11 }
 0x1e0   : > { %1084 = dma.done.wait (%p831_p12), %s561_s1, 128  }
 0x1e1   : > { %1086 = vsyncadd (%p831_p12), %s561_s1, 4294967168  ;;  %s571_s28 = scalar_lea.sflag [#allocation10], %s560_s16 }
 0x1e2   : > { %1088 = dma.done.wait (%p831_p12), %s571_s28, 128  }
 0x1e3   : > { %1090 = vsyncadd (%p831_p12), %s571_s28, 4294967168  ;;  %s26_s30 = sadd.s32 1, %s1371_s13   ;;  %s1372_s18 = smov %s1097_s19 }
 0x1e4   : > { %p23_p0 = scmp.ge.s32.totalorder %s26_s30, 4   ;;  %s1373_s19 = smov %s1101_s20 }
 0x1e5   : > { %s1374_s20 = smov %s1251_s23  ;;  %s1375_s21 = smov %s1109_s22 }
 0x1e6   : > { %s1376_s22 = smov %s1379_s11  ;;  %s1377_s23 = smov %s26_s30 }
 0x1e7   :  { %25 = sbr.rel (!%p23_p0) target bundleno = 12 (0xc), region = 106 }
 0x1ec   :  { %577 = vsyncpa [#allocation3], 1 }
 0x1ed   :  { %579 = vsyncpa [#allocation3 + $0x1], 1 }
 0x1ee   :  { %580 = vsyncpa [#allocation6], 1 }
 0x1ef   :  { %581 = vsyncpa [#allocation4], 1 }
 0x1f0   :  { %583 = vsyncpa [#allocation4 + $0x1], 1 }
 0x1f1   :  { %584 = vsyncpa [#allocation10], 1 }
 0x1f2   :  { %586 = vsyncpa [#allocation10 + $0x1], 1 }

// kernel: tpu_custom_call.1
= control target key start
LH: loop header
LB: loop body
LE: loop exit
PB: predicated region body
PF: predicated region fallthrough
CT: control target
= control target key end

     0   :  { %s1350_s0 = inlined_call_operand.hbm [shape: f32[2,16,128], index: 0, kind: input, shape index: {}]   ;;  %s1351_s1 = inlined_call_operand.hbm [shape: f32[1,128], index: 1, kind: input, shape index: {}]   ;;  %s1352_s2 = inlined_call_operand.vmem [shape: f32[1,128], index: 2, kind: input, shape index: {}]   ;;  %s1353_s3 = inlined_call_operand.hbm [shape: bf16[128,256], index: 3, kind: input, shape index: {}]   ;;  %s1354_s4 = inlined_call_operand.hbm [shape: bf16[2,16,128], index: 4, kind: output, shape index: {0}]   ;;  %s1355_s5 = inlined_call_operand.hbm [shape: bf16[2,16,128], index: 5, kind: output, shape index: {1}]  }
   0x1   :  { %1358 = sst [smem:[#allocation16_spill]] %s1351_s1 }
   0x2   :  { %1359 = sst [smem:[#allocation17_spill]] %s1353_s3 }
   0x3   :  { %11 = vsyncpa [#allocation3], 0 }
   0x4   :  { %13 = vsyncpa [#allocation3 + $0x1], 0 }
   0x5   :  { %14 = vsyncpa [#allocation6], 0 }
   0x6   :  { %15 = vsyncpa [#allocation4], 0 }
   0x7   :  { %17 = vsyncpa [#allocation4 + $0x1], 0 }
   0x8   :  { %18 = vsyncpa [#allocation10], 0 }
   0x9   :  { %20 = vsyncpa [#allocation10 + $0x1], 0  ;;  %s1152_s18 = smov 0   ;;  %s1154_s19 = smov 0  }
   0xa   :  { %s1156_s20 = smov 0   ;;  %s1158_s21 = smov 0  }
   0xb   :  { %s1160_s22 = smov 0   ;;  %s1162_s23 = smov 0  }
   0xc LB: > { %1360 = sst [smem:[#allocation15_spill]] %s1113_s23  ;;  %s688_s24 = sadd.s32 4294967295, %s1113_s23   ;;  %s1113_s23 = sphi %s1162_s23, %s1377_s23   ;;  %s1109_s22 = sphi %s1160_s22, %s1376_s22   ;;  %s1105_s21 = sphi %s1158_s21, %s1375_s21   ;;  %s1101_s20 = sphi %s1156_s20, %s1374_s20   ;;  %s1097_s19 = sphi %s1154_s19, %s1373_s19   ;;  %s1093_s18 = sphi %s1152_s18, %s1372_s18  }
   0xd   : > { %s689_s25 = sadd.s32 4294967294, %s1113_s23   ;;  %p54_p0 = scmp.ne.s32.totalorder %s1101_s20, %s1097_s19 }
   0xe   : > { %p55_p1 = scmp.eq.s32.totalorder %s1113_s23, 0  ;;  %p60_p2 = scmp.ne.s32.totalorder %s1097_s19, %s1093_s18 }
   0xf   : > { %p1190_p3 = scmp.eq.s32.totalorder %s688_s24, 0  ;;  %p149_p4 = scmp.eq.s32.totalorder %s688_s24, 1 }
  0x10   : > { %p1194_p5 = por %p55_p1, %p54_p0  ;;  %p155_p6 = scmp.eq.s32.totalorder %s689_s25, 1 }
  0x11   : > { %p1200_p7 = por %p1190_p3, %p60_p2  ;;  %p1204_p8 = por %p149_p4, %p54_p0 }
  0x12   : > { %p1208_p9 = por %p155_p6, %p60_p2  ;;  %p690_p10 = scmp.ge.s32.totalorder %s1113_s23, 1 }
  0x13   : > { %p190_p11 = scmp.lt.s32.totalorder %s1113_s23, 3  ;;  %s1366_s1 = sld [smem:[#allocation16_spill]] }
  0x14   : > { %s1115_s11 = smov [#allocation5]   ;;  %p693_p13 = scmp.ge.s32.totalorder %s1113_s23, 2 }
  0x15   : > { %p1217_p12 = pnand %p690_p10, %p190_p11  ;;  %s204_s12 = sshll.u32 %s1115_s11, 4  ;;  %s205_s12 = int_to_ptr.vmem [resolvable:$true] %s204_s12 }
  0x16   : > { %p838_p1 = scmp.lt.s32.totalorder %s1113_s23, 2  ;;  %s1368_s3 = sld [smem:[#allocation17_spill]] }
  0x17   : > { %p818_p0 = pneg %p1217_p12  ;;  %s1116_s17 = smov [#allocation7]  }
  0x18   : > { %p1232_p4 = pnand %p838_p1, %p1194_p5  ;;  %s218_s24 = sshll.u32 %s1116_s17, 4  ;;  %s219_s24 = int_to_ptr.vmem [resolvable:$true] %s218_s24 }
  0x19   : > { %s202_s9 = sshll.u32 %s1366_s1, 4  ;;  %p819_p2 = pnand %p818_p0, %p1190_p3  ;;  %s203_s9 = int_to_ptr.hbm [resolvable:$true] %s202_s9 }
  0x1a   : > { %s1117_s25 = smov 128   ;;  %s1118_s7 = smov 8  }
  0x1b   : > { %821 = dma.hbm_to_vmem [thread:$0]  (!%p819_p2), %s203_s9, 16, %s205_s12, [#allocation6]  }
  0x1c   : > { %s216_s15 = sshll.u32 %s1368_s3, 4  ;;  %s232_s8 = sand.u32 1, %s1101_s20   ;;  %s217_s15 = int_to_ptr.hbm [resolvable:$true] %s216_s15 }
  0x1d   : > { %824 = dma.hbm_to_vmem [thread:$0]  (!%p819_p2), %s217_s15, 2048, %s219_s24, [#allocation6], %s1117_s25, %s1117_s25, %s1118_s7  }
  0x1e   : > { %s38_s11 = sadd.s32 1, %s1109_s22  ;;  %s694_s13 = sshll.u32 %s232_s8, 4 }
  0x1f   : > { %p40_p6 = scmp.ge.s32.totalorder %s38_s11, 2  ;;  %s775_s28 = sshll.u32 %s1109_s22, 4 }
  0x20   : > { %s236_s14 = scalar_lea.vmem [#allocation2], %s694_s13  ;;  %s243_s9 = scalar_lea.hbm %s1350_s0, %s775_s28 }
  0x21   : > { %s246_s26 = sshll.u32 %s236_s14, 4  ;;  %s1379_s11 = smov (%p40_p6, %s38_s11), 0  ;;  %s247_s26 = int_to_ptr.vmem [resolvable:$true] %s246_s26 }
  0x22   : > { %s42_s12 = ssub.s32 %s1109_s22, %s1379_s11  ;;  %s244_s15 = sshll.u32 %s243_s9, 4  ;;  %s245_s15 = int_to_ptr.hbm [resolvable:$true] %s244_s15 }
  0x23   : > { %p45_p5 = scmp.eq.s32.totalorder %s42_s12, 0  ;;  %s233_s24 = scalar_lea.sflag [#allocation3], %s232_s8 }
  0x24   : > { %828 = dma.hbm_to_vmem [thread:$0]  (!%p1232_p4), %s245_s15, 256, %s247_s26, %s233_s24, %s1117_s25, %s1117_s25, %s1118_s7  }
  0x25   : > { %s1370_s3 = sadd.s32 1, %s1101_s20  ;;  %258 = sbr.rel (%p1217_p12) target bundleno = 475 (0x1db), region = 36 }
  0x26   : > { %s1251_s23 = scalar_select %p45_p5, %s1101_s20, %s1370_s3  }
  0x27   : > { %s1256_s13 = sand.u32 (!%p1217_p12), 1, %s1097_s19  }
  0x28   : > { %s698_s1 = sshll.u32 (!%p1217_p12), %s1256_s13, 4  ;;  %s261_s28 = scalar_lea.sflag (!%p1217_p12), [#allocation3], %s1256_s13 }
  0x29   : > { %s264_s14 = scalar_lea.vmem (!%p1217_p12), [#allocation2], %s698_s1 }
  0x2a   : > { %1076 = dma.done.wait (%p1200_p7), %s261_s28, 256  }
  0x2b   : > { %1078 = vsyncadd (%p1200_p7), %s261_s28, 4294967040 }
  0x2c   : > { %1080 = dma.done.wait (%p1190_p3), [#allocation6], 2064  }
  0x2d   : > { %1082 = vsyncadd (%p1190_p3), [#allocation6], 4294965232  ;;  %v310_v0 = vld [vmem:[%s264_s14] sm:$0xff]  ;;  %v311_v1 = vld [vmem:[%s264_s14 + $0x8] sm:$0xff]  ;;  %v1119_v2 = vmov 128.0   ;;  %s701_s27 = sshll.u32 %s1256_s13, 3 }
  0x2e   : > { %312 = vadd.xlane.f32.xlu0 %v310_v0  ;;  %899 = vrcp.f32 %v1119_v2  ;;  %v761_v17 = vld [vmem:[#allocation7 + $0x70] sm:$0xf]  ;;  %v791_v18 = vld [vmem:[#allocation7 + $0x74] sm:$0xf0]  ;;  %v790_v19 = vld [vmem:[#allocation7 + $0x74] sm:$0xf] }
  0x2f   : > { %v762_v20 = vor.u32 %v791_v18, %v761_v17  ;;  %v763_v21 = vld [vmem:[#allocation7 + $0x78] sm:$0xf0]  ;;  %v753_v23 = vld [vmem:[#allocation7 + $0x60] sm:$0xf]  ;;  %v789_v24 = vld [vmem:[#allocation7 + $0x64] sm:$0xf0] }
  0x30   : > { %v766_v22 = vor.u32 %v790_v19, %v763_v21  ;;  %v788_v25 = vld [vmem:[#allocation7 + $0x64] sm:$0xf]  ;;  %v754_v26 = vor.u32 %v789_v24, %v753_v23  ;;  %v755_v27 = vld [vmem:[#allocation7 + $0x68] sm:$0xf0]  ;;  %v745_v29 = vld [vmem:[#allocation7 + $0x50] sm:$0xf] }
  0x31   : > { %468 = vmatpush.bf16.msra.mxu0 %v762_v20  ;;  %v758_v28 = vor.u32 %v788_v25, %v755_v27  ;;  %v787_v30 = vld [vmem:[#allocation7 + $0x54] sm:$0xf0]  ;;  %v786_v31 = vld [vmem:[#allocation7 + $0x54] sm:$0xf]  ;;  %v747_v33 = vld [vmem:[#allocation7 + $0x58] sm:$0xf0] }
  0x32   : > { %482 = vmatpush.bf16.msra.mxu1 %v766_v22  ;;  %v746_v32 = vor.u32 %v787_v30, %v745_v29  ;;  %v750_v34 = vor.u32 %v786_v31, %v747_v33  ;;  %v737_v35 = vld [vmem:[#allocation7 + $0x40] sm:$0xf]  ;;  %v785_v36 = vld [vmem:[#allocation7 + $0x44] sm:$0xf0]  ;;  %v784_v37 = vld [vmem:[#allocation7 + $0x44] sm:$0xf] }
  0x33   : > { %v738_v38 = vor.u32 %v785_v36, %v737_v35  ;;  %v739_v39 = vld [vmem:[#allocation7 + $0x48] sm:$0xf0]  ;;  %v729_v41 = vld [vmem:[#allocation7 + $0x30] sm:$0xf]  ;;  %v783_v42 = vld [vmem:[#allocation7 + $0x34] sm:$0xf0] }
  0x34   : > { %v900_v3 = vpop.eup %899  ;;  %v742_v40 = vor.u32 %v784_v37, %v739_v39  ;;  %v782_v43 = vld [vmem:[#allocation7 + $0x34] sm:$0xf]  ;;  %v730_v44 = vor.u32 %v783_v42, %v729_v41  ;;  %v731_v45 = vld [vmem:[#allocation7 + $0x38] sm:$0xf0]  ;;  %v721_v47 = vld [vmem:[#allocation7 + $0x20] sm:$0xf] }
  0x35   : > { %v317_v4 = vmul.f32 128.0, %v900_v3  ;;  %vm321_vm0 = vweird.f32 %v900_v3  ;;  %469 = vmatpush.bf16.msra.mxu0 %v754_v26  ;;  %v734_v46 = vor.u32 %v782_v43, %v731_v45  ;;  %v781_v48 = vld [vmem:[#allocation7 + $0x24] sm:$0xf0]  ;;  %v780_v49 = vld [vmem:[#allocation7 + $0x24] sm:$0xf]  ;;  %s792_s29 = sshll.u32 %s1105_s21, 3 }
  0x36   : > { %314 = vadd.xlane.f32.xlu0 %v311_v1  ;;  %483 = vmatpush.bf16.msra.mxu1 %v758_v28  ;;  %v722_v50 = vor.u32 %v781_v48, %v721_v47  ;;  %v723_v51 = vld [vmem:[#allocation7 + $0x28] sm:$0xf0]  ;;  %v713_v53 = vld [vmem:[#allocation7 + $0x10] sm:$0xf]  ;;  %v779_v54 = vld [vmem:[#allocation7 + $0x14] sm:$0xf0]  ;;  %s523_s8 = scalar_lea.hbm %s1354_s4, %s792_s29  ;;  %s542_s24 = scalar_lea.hbm %s1355_s5, %s792_s29 }
  0x37   : > { %v318_v5 = vsub.f32 1.0, %v317_v4  ;;  %v726_v52 = vor.u32 %v780_v49, %v723_v51  ;;  %v778_v55 = vld [vmem:[#allocation7 + $0x14] sm:$0xf]  ;;  %v714_v56 = vor.u32 %v779_v54, %v713_v53  ;;  %v715_v57 = vld [vmem:[#allocation7 + $0x18] sm:$0xf0]  ;;  %s299_s10 = scalar_lea.vmem [#allocation8], %s701_s27 }
  0x38   : > { %v705_v58 = vld [vmem:[#allocation7] sm:$0xf]  ;;  %v777_v59 = vld [vmem:[#allocation7 + $0x4] sm:$0xf0]  ;;  %v718_v60 = vor.u32 %v778_v55, %v715_v57  ;;  %v776_v61 = vld [vmem:[#allocation7 + $0x4] sm:$0xf] }
  0x39   : > { %v319_v6 = vmul.f32 %v900_v3, %v318_v5  ;;  %470 = vmatpush.bf16.msra.mxu0 %v746_v32  ;;  %v707_v62 = vld [vmem:[#allocation7 + $0x8] sm:$0xf0]  ;;  %v897_v22 = vld [vmem:[#allocation5] ss:$0 sm:$0xff]  ;;  %s524_s16 = sshll.u32 %s299_s10, 4  ;;  %s306_s17 = scalar_lea.vmem [#allocation9], %s701_s27  ;;  %s1295_s16 = int_to_ptr.vmem [resolvable:$true] %s524_s16 }
  0x3a   : > { %484 = vmatpush.bf16.msra.mxu1 %v750_v34  ;;  %v710_v2 = vor.u32 %v776_v61, %v707_v62  ;;  %v898_v27 = vld [vmem:[%s1352_s2] ss:$0 sm:$0xff]  ;;  %s543_s9 = sshll.u32 %s306_s17, 4  ;;  %s526_s1 = sshll.u32 %s523_s8, 4  ;;  %s1297_s9 = int_to_ptr.vmem [resolvable:$true] %s543_s9  ;;  %s527_s1 = int_to_ptr.hbm [resolvable:$true] %s526_s1 }
  0x3b   : > { %v320_v7 = vadd.f32 %v900_v3, %v319_v6  ;;  %s545_s21 = sshll.u32 %s542_s24, 4  ;;  %s505_s28 = scalar_lea.sflag [#allocation4], %s1256_s13  ;;  %s1299_s21 = int_to_ptr.hbm [resolvable:$true] %s545_s21 }
  0x3c   : > { %s1009_s14 = sshra.s32 %s527_s1, 4  ;;  %s1015_s29 = scalar_lea.hbm %s1354_s4, 16  ;;  %s1010_s14 = int_to_ptr.hbm [resolvable:$true] %s1009_s14 }
  0x3d   : > { %v1268_v8 = vsel %vm321_vm0, %v900_v3, %v320_v7  ;;  %471 = vmatpush.bf16.msra.mxu0 %v738_v38  ;;  %s1011_s3 = scalar_lea.hbm %s1010_s14, 8  ;;  %p1016_p11 = scmp.lt.s32.totalorder %s1010_s14, %s1354_s4 }
  0x3e   : > { %485 = vmatpush.bf16.msra.mxu1 %v742_v40  ;;  %p1012_p3 = scmp.ne.s32.totalorder %s1010_s14, %s1011_s3  ;;  %p1017_p12 = scmp.lt.s32.totalorder %s1015_s29, %s1011_s3 }
  0x40   : > { %p1013_p7 = pnand %p1012_p3, %p1204_p8  ;;  %p1018_p0 = por %p1017_p12, %p1016_p11 }
  0x41   : > { %472 = vmatpush.bf16.msra.mxu0 %v730_v44 }
  0x42   : > { %486 = vmatpush.bf16.msra.mxu1 %v734_v46  ;;  %p1014_p10 = pneg %p1013_p7 }
  0x44   : > { %p1019_p1 = pnand %p1018_p0, %p1014_p10 }
  0x45   : > { %473 = vmatpush.bf16.msra.mxu0 %v722_v50 }
  0x46   : > { %487 = vmatpush.bf16.msra.mxu1 %v726_v52 }
  0x49   : > { %474 = vmatpush.bf16.msra.mxu0 %v714_v56 }
  0x4a   : > { %488 = vmatpush.bf16.msra.mxu1 %v718_v60 }
  0x4e   : > { %489 = vmatpush.bf16.msra.mxu1 %v710_v2 }
  0xa1   : > { %v313_v9 = vpop.xlane.xlu0 %312 }
  0xa2   : > { %v323_v10 = vmul.f32 %v1268_v8, %v313_v9 }
  0xa4   : > { %v1271_v11 = vsub.f32 %v310_v0, %v323_v10  ;;  %v706_v0 = vor.u32 %v777_v59, %v705_v58 }
  0xa6   : > { %v327_v12 = vmul.f32 %v1271_v11, %v1271_v11  ;;  %475 = vmatpush.bf16.msra.mxu0 %v706_v0 }
  0xa8   : > { %329 = vadd.xlane.f32.xlu1 %v327_v12 }
  0xa9   : > { %v315_v13 = vpop.xlane.xlu0 %314 }
  0xaa   : > { %v324_v14 = vmul.f32 %v1268_v8, %v315_v13 }
  0xac   : > { %v1276_v15 = vsub.f32 %v311_v1, %v324_v14 }
  0xae   : > { %v328_v16 = vmul.f32 %v1276_v15, %v1276_v15 }
  0xb0   : > { %331 = vadd.xlane.f32.xlu1 %v328_v16 }
 0x11b   : > { %v330_v63 = vpop.xlane.xlu1 %329 }
 0x11c   : > { %v333_v1 = vmul.f32 %v330_v63, %v1268_v8 }
 0x11e   : > { %v335_v3 = vadd.f32 1e-05, %v333_v1 }
 0x120   : > { %901 = vrsqrt.f32 %v335_v3  ;;  %vm343_vm2 = vweird.f32 %v335_v3 }
 0x123   : > { %v332_v4 = vpop.xlane.xlu1 %331 }
 0x124   : > { %v334_v5 = vmul.f32 %v332_v4, %v1268_v8 }
 0x126   : > { %v902_v6 = vpop.eup %901  ;;  %v336_v7 = vadd.f32 1e-05, %v334_v5 }
 0x127   : > { %v338_v9 = vmul.f32 %v902_v6, %v335_v3  ;;  %vm344_vm1 = vweird.f32 %v902_v6 }
 0x128   : > { %903 = vrsqrt.f32 %v336_v7  ;;  %vm345_vm3 = vmor %vm343_vm2, %vm344_vm1  ;;  %vm353_vm5 = vweird.f32 %v336_v7 }
 0x129   : > { %v339_v10 = vmul.f32 %v902_v6, %v338_v9 }
 0x12b   : > { %v340_v12 = vmul.f32 0.5, %v339_v10 }
 0x12d   : > { %v341_v13 = vsub.f32 1.5, %v340_v12 }
 0x12e   : > { %v904_v14 = vpop.eup %903 }
 0x12f   : > { %v342_v16 = vmul.f32 %v902_v6, %v341_v13  ;;  %v348_v17 = vmul.f32 %v904_v14, %v336_v7  ;;  %vm354_vm4 = vweird.f32 %v904_v14 }
 0x130   : > { %vm355_vm6 = vmor %vm353_vm5, %vm354_vm4 }
 0x131   : > { %v349_v18 = vmul.f32 %v904_v14, %v348_v17  ;;  %v346_v20 = vsel %vm345_vm3, %v902_v6, %v342_v16 }
 0x132   : > { %v357_v8 = vmul.f32 %v346_v20, %v1271_v11 }
 0x133   : > { %v350_v19 = vmul.f32 0.5, %v349_v18 }
 0x134   : > { %v363_v26 = vmul.f32 %v897_v22, %v357_v8 }
 0x135   : > { %v351_v21 = vsub.f32 1.5, %v350_v19 }
 0x136   : > { %v369_v29 = vadd.f32 %v898_v27, %v363_v26 }
 0x137   : > { %v352_v23 = vmul.f32 %v904_v14, %v351_v21 }
 0x139   : > { %v356_v24 = vsel %vm355_vm6, %v904_v14, %v352_v23 }
 0x13a   : > { %v358_v25 = vmul.f32 %v356_v24, %v1276_v15 }
 0x13c   : > { %v364_v28 = vmul.f32 %v897_v22, %v358_v25 }
 0x13e   : > { %v370_v30 = vadd.f32 %v898_v27, %v364_v28 }
 0x140   : > { %v371_v31 = vpack.c.bf16 %v370_v30, %v369_v29 }
 0x142   : > { %476 = vmatmul.bf16.vlgmr.msra.gmra.mxu0 %v371_v31  ;;  %490 = vmatmul.bf16.vlgmr.msra.gmra.mxu1 %v371_v31 }
 0x1bf   : > { %v477_v11 = vpop.f32.mrf.mxu0  ;;  %v491_v32 = vpop.f32.mrf.mxu1 }
 0x1c7   : > { %v479_v15 = vpop.f32.mrf.mxu0  ;;  %v493_v33 = vpop.f32.mrf.mxu1 }
 0x1c8   : > { %v797_v34 = vpack.c.bf16 %v479_v15, %v477_v11  ;;  %v802_v35 = vpack.c.bf16 %v493_v33, %v491_v32 }
 0x1ca   : > { %798 = vst [vmem:[%s299_s10] sm:$0xff] %v797_v34  }
 0x1cb   : > { %803 = vst [vmem:[%s306_s17] sm:$0xff] %v802_v35  }
 0x1cc   : > { %1022 = shalt.err (!%p1019_p1)
}
 0x1cd   : > { %s1120_s10 = smov 64   ;;  %s1121_s8 = smov 4  }
 0x1ce   : > { %814 = dma.vmem_to_hbm [thread:$0]  (%p1204_p8), %s1295_s16, 128, %s527_s1, %s505_s28, %s1120_s10, %s1120_s10, %s1121_s8  }
 0x1cf   : > { %s510_s17 = scalar_lea.sflag [#allocation10], %s1256_s13  ;;  %s1037_s12 = sshra.s32 %s1299_s21, 4  ;;  %s1038_s12 = int_to_ptr.hbm [resolvable:$true] %s1037_s12 }
 0x1d0   : > { %s1039_s15 = scalar_lea.hbm %s1038_s12, 8  ;;  %s1043_s3 = scalar_lea.hbm %s1355_s5, 16 }
 0x1d1   : > { %p1040_p2 = scmp.ne.s32.totalorder %s1038_s12, %s1039_s15  ;;  %p1044_p5 = scmp.lt.s32.totalorder %s1038_s12, %s1355_s5 }
 0x1d2   : > { %p1045_p3 = scmp.lt.s32.totalorder %s1043_s3, %s1039_s15 }
 0x1d3   : > { %p1041_p4 = pnand %p1040_p2, %p1204_p8 }
 0x1d4   : > { %p1046_p7 = por %p1045_p3, %p1044_p5 }
 0x1d5   : > { %p1042_p6 = pneg %p1041_p4 }
 0x1d7   : > { %p1047_p10 = pnand %p1046_p7, %p1042_p6 }
 0x1d9   : > { %1050 = shalt.err (!%p1047_p10)
}
 0x1da   : > { %815 = dma.vmem_to_hbm [thread:$0]  (%p1204_p8), %s1297_s9, 128, %s1299_s21, %s510_s17, %s1120_s10, %s1120_s10, %s1121_s8  }
 0x1db PF: > { %s1371_s13 = sld [smem:[#allocation15_spill]]  ;;  %s560_s16 = sand.u32 1, %s1093_s18  }
 0x1dc   : > { %p830_p11 = pnand %p693_p13, %p1208_p9  ;;  %s561_s1 = scalar_lea.sflag [#allocation4], %s560_s16 }
 0x1de   : > { %p831_p12 = pneg %p830_p11 }
 0x1e0   : > { %1084 = dma.done.wait (%p831_p12), %s561_s1, 128  }
 0x1e1   : > { %1086 = vsyncadd (%p831_p12), %s561_s1, 4294967168  ;;  %s571_s28 = scalar_lea.sflag [#allocation10], %s560_s16 }
 0x1e2   : > { %1088 = dma.done.wait (%p831_p12), %s571_s28, 128  }
 0x1e3   : > { %1090 = vsyncadd (%p831_p12), %s571_s28, 4294967168  ;;  %s26_s30 = sadd.s32 1, %s1371_s13   ;;  %s1372_s18 = smov %s1097_s19 }
 0x1e4   : > { %p23_p0 = scmp.ge.s32.totalorder %s26_s30, 4   ;;  %s1373_s19 = smov %s1101_s20 }
 0x1e5   : > { %s1374_s20 = smov %s1251_s23  ;;  %s1375_s21 = smov %s1109_s22 }
 0x1e6   : > { %s1376_s22 = smov %s1379_s11  ;;  %s1377_s23 = smov %s26_s30 }
 0x1e7   :  { %25 = sbr.rel (!%p23_p0) target bundleno = 12 (0xc), region = 106 }
 0x1ec   :  { %577 = vsyncpa [#allocation3], 1 }
 0x1ed   :  { %579 = vsyncpa [#allocation3 + $0x1], 1 }
 0x1ee   :  { %580 = vsyncpa [#allocation6], 1 }
 0x1ef   :  { %581 = vsyncpa [#allocation4], 1 }
 0x1f0   :  { %583 = vsyncpa [#allocation4 + $0x1], 1 }
 0x1f1   :  { %584 = vsyncpa [#allocation10], 1 }
 0x1f2   :  { %586 = vsyncpa [#allocation10 + $0x1], 1 }

</bundles_post_ra>
